<compile_context>
chip_gen: v7x
topology: tpu7x:2x2x1
jax: 0.10.0
libtpu: 0.0.40
codegen_flags: <defaults>
</compile_context>

<pallas_src>
import jax
import jax.numpy as jnp
from jax.experimental import pallas as pl
from jax.experimental.pallas import tpu as pltpu


def _round_up(x, m):
    return ((x + m - 1) // m) * m


def _log_sigmoid(x):
    # Numerically stable log(sigmoid(x)) = -softplus(-x)
    z = -x
    return -(jnp.maximum(z, 0.0) + jnp.log1p(jnp.exp(-jnp.abs(z))))


def skipgram_loss_kernel(u_ref, v_ref, sign_ref, out_ref, acc_ref):
    # u_ref:    (D, TN)   bf16 u-embeddings (pair axis on lanes, D on sublanes)
    # v_ref:    (D, TN)   bf16 v-embeddings
    # sign_ref: (1, TN)   f32: +1 positive pair, -1 negative pair, 0 padding
    # out_ref:  (1, 8, 128) per-core partial loss block (value splatted)
    # acc_ref:  (1, TN)   f32 VMEM lane-dense accumulator (per core)
    i = pl.program_id(1)

    @pl.when(i == 0)
    def _init():
        acc_ref[...] = jnp.zeros_like(acc_ref)

    u = u_ref[...].astype(jnp.float32)
    v = v_ref[...].astype(jnp.float32)
    sign = sign_ref[...]

    # Per-pair dot product: sublane (D) reduction -> lane-dense (1, TN).
    score = jnp.sum(u * v, axis=0, keepdims=True)
    x = sign * score
    ls = _log_sigmoid(x)
    # Mask padded lanes; vector add into the lane-dense accumulator.
    acc_ref[...] += jnp.where(sign != 0.0, ls, 0.0)

    @pl.when(i == pl.num_programs(1) - 1)
    def _finalize():
        total = -jnp.sum(acc_ref[...])          # one cross-lane reduce per core
        out_ref[...] = jnp.full(out_ref.shape, total, dtype=jnp.float32)


def skipgram_forward(u_weight, v_weight, pos_u, pos_v, neg_u, neg_v):
    """Equivalent of SkipGramModel.forward.

    pos_u, pos_v : int32 (Bp,)  positive (center, context) word ids
    neg_u, neg_v : int32 (Bn,)  negative-sample (center, context) word ids
    Returns the scalar loss  -(sum logsig(s_pos) + sum logsig(-s_neg)).
    """
    D = u_weight.shape[1]

    u_ids = jnp.concatenate([pos_u, neg_u]).astype(jnp.int32)
    v_ids = jnp.concatenate([pos_v, neg_v]).astype(jnp.int32)
    n_pos = pos_u.shape[0]
    n_neg = neg_u.shape[0]
    n = n_pos + n_neg

    # Adaptive lane-dense pair tile: keep 2 inputs x 2 pipeline buffers of
    # (D, tile_n) bf16 around a few MiB, capped at 8192 lanes.
    budget_bytes = 8 * 1024 * 1024
    max_tile_n = budget_bytes // (2 * 2 * D * 2)            # 2 inputs x 2 bufs x D x 2B
    max_tile_n = max(512, min(8192, (max_tile_n // 128) * 128))
    tile_n = min(max_tile_n, _round_up(n, 128))

    # Pad the pair axis so the tiles split evenly across (up to) 2 TensorCores.
    n_pad = _round_up(n, 2 * tile_n)
    pad = n_pad - n
    num_tiles = n_pad // tile_n
    half = num_tiles // 2                                    # tiles per core slice

    u_ids_p = jnp.pad(u_ids, (0, pad))
    v_ids_p = jnp.pad(v_ids, (0, pad))
    sign = jnp.concatenate([
        jnp.ones((n_pos,), jnp.float32),
        -jnp.ones((n_neg,), jnp.float32),
        jnp.zeros((pad,), jnp.float32),
    ]).reshape(1, n_pad)

    # Glue: data-dependent row gathers in plain JAX at bf16 (halved HBM traffic),
    # pair axis transposed onto lanes for the kernel.
    u_w16 = u_weight.astype(jnp.bfloat16)
    v_w16 = v_weight.astype(jnp.bfloat16)
    u_emb_t = jnp.take(u_w16, u_ids_p, axis=0).T             # (D, n_pad) bf16
    v_emb_t = jnp.take(v_w16, v_ids_p, axis=0).T             # (D, n_pad) bf16

    grid = (2, half)                                          # (core split, pair tiles)

    partials = pl.pallas_call(
        skipgram_loss_kernel,
        out_shape=jax.ShapeDtypeStruct((2, 8, 128), jnp.float32),
        grid_spec=pltpu.PrefetchScalarGridSpec(
            num_scalar_prefetch=0,
            grid=grid,
            in_specs=[
                pl.BlockSpec((D, tile_n), lambda c, i: (0, c * half + i)),
                pl.BlockSpec((D, tile_n), lambda c, i: (0, c * half + i)),
                pl.BlockSpec((1, tile_n), lambda c, i: (0, c * half + i)),
            ],
            out_specs=pl.BlockSpec((1, 8, 128), lambda c, i: (c, 0, 0)),
            scratch_shapes=[pltpu.VMEM((1, tile_n), jnp.float32)],
        ),
        compiler_params=pltpu.CompilerParams(
            dimension_semantics=("parallel", "arbitrary"),
            vmem_limit_bytes=32 * 1024 * 1024,
        ),
    )(u_emb_t, v_emb_t, sign)

    # Sum the per-core partial losses.
    return partials[0, 0, 0] + partials[1, 0, 0]


def skipgram_forward_ref(u_weight, v_weight, pos_u, pos_v, neg_u, neg_v):
    """Pure-JAX f32 reference mirroring the PyTorch forward."""
    emb_u = jnp.take(u_weight, pos_u, axis=0)
    emb_v = jnp.take(v_weight, pos_v, axis=0)
    score = jnp.sum(jax.nn.log_sigmoid(jnp.sum(emb_u * emb_v, axis=1)))
    neg_emb_u = jnp.take(u_weight, neg_u, axis=0)
    neg_emb_v = jnp.take(v_weight, neg_v, axis=0)
    neg_score = jnp.sum(jax.nn.log_sigmoid(-jnp.sum(neg_emb_u * neg_emb_v, axis=1)))
    return -(score + neg_score)


if __name__ == "__main__":
    emb_size = 50
    emb_dimension = 32
    vocab = 2 * emb_size - 1           # nn.Embedding(2*emb_size - 1, emb_dimension)
    n_pos = 8                          # number of positive pairs
    n_neg = 16                         # number of negative pairs

    key = jax.random.PRNGKey(0)
    k_u, k_v, k_pu, k_pv, k_nu, k_nv = jax.random.split(key, 6)

    initrange = 0.5 / emb_dimension
    u_weight = jax.random.uniform(
        k_u, (vocab, emb_dimension), minval=-initrange, maxval=initrange,
        dtype=jnp.float32)
    # Module init: v_embeddings.weight.uniform_(-0, 0) == zeros.
    v_weight_init = jnp.zeros((vocab, emb_dimension), dtype=jnp.float32)
    # Nonzero v-weights to actually exercise the numerics.
    v_weight_rand = jax.random.uniform(
        k_v, (vocab, emb_dimension), minval=-initrange, maxval=initrange,
        dtype=jnp.float32)

    pos_u = jax.random.randint(k_pu, (n_pos,), 0, vocab, dtype=jnp.int32)
    pos_v = jax.random.randint(k_pv, (n_pos,), 0, vocab, dtype=jnp.int32)
    neg_u = jax.random.randint(k_nu, (n_neg,), 0, vocab, dtype=jnp.int32)
    neg_v = jax.random.randint(k_nv, (n_neg,), 0, vocab, dtype=jnp.int32)

    for v_w in (v_weight_init, v_weight_rand):
        loss = skipgram_forward(u_weight, v_w, pos_u, pos_v, neg_u, neg_v)
        jax.block_until_ready(loss)
        ref = skipgram_forward_ref(u_weight, v_w, pos_u, pos_v, neg_u, neg_v)
        jax.block_until_ready(ref)
        # bf16 embedding shipping -> slightly looser tolerance vs f32 reference.
        assert jnp.allclose(loss, ref, rtol=1e-3, atol=1e-2), (loss, ref)

    print("KERNEL_OK")
</pallas_src>

<mosaic_0001>
module attributes {stable_mosaic.version = 11 : i64} {
  func.func @skipgram_loss_kernel(%arg0: i32, %arg1: i32, %arg2: memref<32x128xbf16, #tpu.memory_space<vmem>>, %arg3: memref<32x128xbf16, #tpu.memory_space<vmem>>, %arg4: memref<1x128xf32, #tpu.memory_space<vmem>>, %arg5: memref<1x8x128xf32, #tpu.memory_space<vmem>>, %arg6: memref<1x128xf32, #tpu.memory_space<vmem>>) attributes {dimension_semantics = [#tpu.dimension_semantics<parallel>, #tpu.dimension_semantics<arbitrary>], iteration_bounds = array<i64: 2, 1>, scalar_prefetch = 0 : i64, scratch_operands = 1 : i64, tpu.core_type = #tpu.core_type<tc>, window_params = [{transform_indices = @transform_0, window_bounds = array<i64: 32, 128>}, {transform_indices = @transform_1, window_bounds = array<i64: 32, 128>}, {transform_indices = @transform_2, window_bounds = array<i64: 1, 128>}, {transform_indices = @transform_3, window_bounds = array<i64: 1, 8, 128>}]} {
    %c0_i32 = arith.constant 0 : i32
    %0 = arith.cmpi eq, %arg1, %c0_i32 : i32
    %1 = arith.extui %0 : i1 to i32
    %c0_i32_0 = arith.constant 0 : i32
    %2 = arith.cmpi ne, %1, %c0_i32_0 : i32
    scf.if %2 {
      %cst_18 = arith.constant 0.000000e+00 : f32
      %34 = vector.broadcast %cst_18 : f32 to vector<1x128xf32>
      %c0_19 = arith.constant 0 : index
      %c0_20 = arith.constant 0 : index
      %35 = vector.load %arg6[%c0_19, %c0_20] : memref<1x128xf32, #tpu.memory_space<vmem>>, vector<1x128xf32>
      tpu.vector_store %arg6[%c0_19, %c0_20], %34 {strides = array<i32>} : memref<1x128xf32, #tpu.memory_space<vmem>>, vector<1x128xf32>,
    } else {
    }
    %c0 = arith.constant 0 : index
    %c0_1 = arith.constant 0 : index
    %3 = vector.load %arg2[%c0, %c0_1] : memref<32x128xbf16, #tpu.memory_space<vmem>>, vector<32x128xbf16>
    %4 = arith.extf %3 : vector<32x128xbf16> to vector<32x128xf32>
    %c0_2 = arith.constant 0 : index
    %c0_3 = arith.constant 0 : index
    %5 = vector.load %arg3[%c0_2, %c0_3] : memref<32x128xbf16, #tpu.memory_space<vmem>>, vector<32x128xbf16>
    %6 = arith.extf %5 : vector<32x128xbf16> to vector<32x128xf32>
    %c0_4 = arith.constant 0 : index
    %c0_5 = arith.constant 0 : index
    %7 = vector.load %arg4[%c0_4, %c0_5] : memref<1x128xf32, #tpu.memory_space<vmem>>, vector<1x128xf32>
    %8 = arith.mulf %4, %6 : vector<32x128xf32>
    %cst = arith.constant dense<0.000000e+00> : vector<128xf32>
    %9 = vector.multi_reduction <add>, %8, %cst [0] : vector<32x128xf32> to vector<128xf32>
    %10 = vector.shape_cast %9 : vector<128xf32> to vector<1x128xf32>
    %11 = arith.mulf %7, %10 : vector<1x128xf32>
    %cst_6 = arith.constant 0.000000e+00 : f32
    %12 = vector.broadcast %cst_6 : f32 to vector<1x128xf32>
    %13 = arith.subf %12, %11 : vector<1x128xf32>
    %cst_7 = arith.constant 0.000000e+00 : f32
    %14 = vector.broadcast %cst_7 : f32 to vector<1x128xf32>
    %15 = arith.maximumf %13, %14 : vector<1x128xf32>
    %16 = math.absf %13 : vector<1x128xf32>
    %cst_8 = arith.constant 0.000000e+00 : f32
    %17 = vector.broadcast %cst_8 : f32 to vector<1x128xf32>
    %18 = arith.subf %17, %16 : vector<1x128xf32>
    %19 = math.exp %18 : vector<1x128xf32>
    %20 = math.log1p %19 : vector<1x128xf32>
    %21 = arith.addf %15, %20 : vector<1x128xf32>
    %cst_9 = arith.constant 0.000000e+00 : f32
    %22 = vector.broadcast %cst_9 : f32 to vector<1x128xf32>
    %23 = arith.subf %22, %21 : vector<1x128xf32>
    %c0_10 = arith.constant 0 : index
    %c0_11 = arith.constant 0 : index
    %24 = vector.load %arg6[%c0_10, %c0_11] : memref<1x128xf32, #tpu.memory_space<vmem>>, vector<1x128xf32>
    %cst_12 = arith.constant 0.000000e+00 : f32
    %25 = vector.broadcast %cst_12 : f32 to vector<1x128xf32>
    %26 = arith.cmpf one, %7, %25 : vector<1x128xf32>
    %cst_13 = arith.constant 0.000000e+00 : f32
    %27 = vector.broadcast %cst_13 : f32 to vector<1x128xf32>
    %28 = arith.select %26, %23, %27 : vector<1x128xi1>, vector<1x128xf32>
    %29 = arith.addf %24, %28 : vector<1x128xf32>
    %c0_14 = arith.constant 0 : index
    %c0_15 = arith.constant 0 : index
    %30 = vector.load %arg6[%c0_14, %c0_15] : memref<1x128xf32, #tpu.memory_space<vmem>>, vector<1x128xf32>
    tpu.vector_store %arg6[%c0_14, %c0_15], %29 {strides = array<i32>} : memref<1x128xf32, #tpu.memory_space<vmem>>, vector<1x128xf32>,
    %c0_i32_16 = arith.constant 0 : i32
    %31 = arith.cmpi eq, %arg1, %c0_i32_16 : i32
    %32 = arith.extui %31 : i1 to i32
    %c0_i32_17 = arith.constant 0 : i32
    %33 = arith.cmpi ne, %32, %c0_i32_17 : i32
    scf.if %33 {
      %c0_18 = arith.constant 0 : index
      %c0_19 = arith.constant 0 : index
      %34 = vector.load %arg6[%c0_18, %c0_19] : memref<1x128xf32, #tpu.memory_space<vmem>>, vector<1x128xf32>
      %35 = vector.shape_cast %34 : vector<1x128xf32> to vector<1x1x128xf32>
      %cst_20 = arith.constant dense<0.000000e+00> : vector<1xf32>
      %36 = vector.multi_reduction <add>, %35, %cst_20 [1, 2] : vector<1x1x128xf32> to vector<1xf32>
      %37 = vector.shape_cast %36 : vector<1xf32> to vector<1x1x1xf32>
      %38 = vector.extract %37[0, 0, 0] : f32 from vector<1x1x1xf32>
      %cst_21 = arith.constant 0.000000e+00 : f32
      %39 = arith.subf %cst_21, %38 : f32
      %40 = vector.broadcast %39 : f32 to vector<1x8x128xf32>
      %c0_22 = arith.constant 0 : index
      %c0_23 = arith.constant 0 : index
      %c0_24 = arith.constant 0 : index
      %41 = vector.load %arg5[%c0_22, %c0_23, %c0_24] : memref<1x8x128xf32, #tpu.memory_space<vmem>>, vector<1x8x128xf32>
      tpu.vector_store %arg5[%c0_22, %c0_23, %c0_24], %40 {strides = array<i32>} : memref<1x8x128xf32, #tpu.memory_space<vmem>>, vector<1x8x128xf32>,
    } else {
    }
    return
  }
  func.func @transform_0(%arg0: i32, %arg1: i32) -> (i32, i32) {
    %c1_i32 = arith.constant 1 : i32
    %0 = arith.muli %arg0, %c1_i32 : i32
    %1 = arith.addi %0, %arg1 : i32
    %c0_i32 = arith.constant 0 : i32
    %c0_i32_0 = arith.constant 0 : i32
    return %c0_i32, %1 : i32, i32
  }
  func.func @transform_1(%arg0: i32, %arg1: i32) -> (i32, i32) {
    %c1_i32 = arith.constant 1 : i32
    %0 = arith.muli %arg0, %c1_i32 : i32
    %1 = arith.addi %0, %arg1 : i32
    %c0_i32 = arith.constant 0 : i32
    %c0_i32_0 = arith.constant 0 : i32
    return %c0_i32, %1 : i32, i32
  }
  func.func @transform_2(%arg0: i32, %arg1: i32) -> (i32, i32) {
    %c1_i32 = arith.constant 1 : i32
    %0 = arith.muli %arg0, %c1_i32 : i32
    %1 = arith.addi %0, %arg1 : i32
    %c0_i32 = arith.constant 0 : i32
    %c0_i32_0 = arith.constant 0 : i32
    return %c0_i32, %1 : i32, i32
  }
  func.func @transform_3(%arg0: i32, %arg1: i32) -> (i32, i32, i32) {
    %c0_i32 = arith.constant 0 : i32
    %c0_i32_0 = arith.constant 0 : i32
    %c0_i32_1 = arith.constant 0 : i32
    return %arg0, %c0_i32, %c0_i32_0 : i32, i32, i32
  }
}

</mosaic_0001>

<bundles_post_ra>
// kernel: tpu_custom_call.1
= control target key start
LH: loop header
LB: loop body
LE: loop exit
PB: predicated region body
PF: predicated region fallthrough
CT: control target
= control target key end

     0   :  { %8 = vsyncpa [#allocation4], 0  ;;  %s994_s0 = inlined_call_operand.hbm [shape: bf16[32,256], index: 0, kind: input, shape index: {}]   ;;  %s995_s1 = inlined_call_operand.hbm [shape: bf16[32,256], index: 1, kind: input, shape index: {}]   ;;  %s996_s2 = inlined_call_operand.vmem [shape: f32[1,256], index: 2, kind: input, shape index: {}]   ;;  %s997_s3 = inlined_call_operand.hbm [shape: f32[2,8,128], index: 3, kind: output, shape index: {}]  }
   0x1   :  { %10 = vsyncpa [#allocation4 + $0x1], 0 }
   0x2   :  { %11 = vsyncpa [#allocation7], 0 }
   0x3   :  { %13 = vsyncpa [#allocation7 + $0x1], 0 }
   0x4   :  { %14 = vsyncpa [#allocation5], 0 }
   0x5   :  { %16 = vsyncpa [#allocation5 + $0x1], 0  ;;  %s756_s12 = smov 0   ;;  %s758_s13 = smov 0  }
   0x6   :  { %s760_s14 = smov 0   ;;  %s762_s15 = smov 0  }
   0x7   :  { %s764_s16 = smov 0   ;;  %s766_s17 = smov 0  }
   0x8 LB: > { %s470_s18 = sadd.s32 4294967295, %s727_s17   ;;  %s471_s19 = sadd.s32 4294967294, %s727_s17   ;;  %s727_s17 = sphi %s766_s17, %s22_s17   ;;  %s723_s16 = sphi %s764_s16, %s1016_s16   ;;  %s719_s15 = sphi %s762_s15, %s1015_s15   ;;  %s715_s14 = sphi %s760_s14, %s1014_s14   ;;  %s711_s13 = sphi %s758_s13, %s1013_s13   ;;  %s707_s12 = sphi %s756_s12, %s1012_s12  }
   0x9   : > { %s34_s20 = sadd.s32 1, %s723_s16  ;;  %s43_s21 = sadd.s32 1, %s715_s14 }
   0xa   : > { %p36_p0 = scmp.ge.s32.totalorder %s34_s20, 2  ;;  %p50_p1 = scmp.ne.s32.totalorder %s715_s14, %s711_s13 }
   0xb   : > { %p51_p2 = scmp.eq.s32.totalorder %s727_s17, 0  ;;  %p56_p3 = scmp.ne.s32.totalorder %s711_s13, %s707_s12 }
   0xc   : > { %s1018_s20 = smov (%p36_p0, %s34_s20), 0  ;;  %p57_p5 = scmp.eq.s32.totalorder %s470_s18, 0 }
   0xd   : > { %p797_p4 = por %p51_p2, %p50_p1  ;;  %s40_s23 = ssub.s32 %s723_s16, %s1018_s20 }
   0xe   : > { %p136_p6 = scmp.eq.s32.totalorder %s470_s18, 1  ;;  %p41_p7 = scmp.eq.s32.totalorder %s40_s23, 0 }
   0xf   : > { %p803_p8 = por %p57_p5, %p56_p3  ;;  %p142_p10 = scmp.eq.s32.totalorder %s471_s19, 1 }
  0x10   : > { %p807_p9 = por %p136_p6, %p50_p1  ;;  %p523_p13 = scmp.lt.s32.totalorder %s727_s17, 2 }
  0x11   : > { %s1002_s24 = scalar_select %p803_p8, 1, 0 }
  0x12   : > { %s1003_s25 = scalar_select %p807_p9, 1, 0 }
  0x13   : > { %s812_s26 = scalar_select %p41_p7, %s715_s14, %s43_s21  }
  0x14   : > { %p814_p11 = por %p142_p10, %p56_p3  ;;  %s821_s28 = sand.u32 1, %s715_s14  }
  0x15   : > { %s474_s29 = sshll.u32 %s821_s28, 4  ;;  %s475_s30 = sshll.u32 %s723_s16, 6 }
  0x16   : > { %s1004_s27 = scalar_select %p814_p11, 1, 0 }
  0x17   : > { %s830_s6 = scalar_lea.hbm %s994_s0, %s475_s30  ;;  %s166_s7 = scalar_lea.vmem [#allocation3], %s474_s29 }
  0x18   : > { %s173_s8 = sshll.u32 %s166_s7, 4  ;;  %p838_p0 = pnand %p523_p13, %p797_p4  ;;  %s834_s8 = int_to_ptr.vmem [resolvable:$true] %s173_s8 }
  0x19   : > { %s163_s10 = scalar_lea.sflag [#allocation4], %s821_s28  ;;  %s581_s11 = scalar_lea.hbm %s830_s6, 256 }
  0x1a   : > { %p582_p1 = scmp.ne.s32.totalorder %s830_s6, %s581_s11  ;;  %p583_p2 = pneg %p838_p0 }
  0x1b   : > { %s586_s21 = scalar_lea.hbm %s994_s0, 512  ;;  %p587_p4 = scmp.lt.u32.totalorder %s830_s6, %s994_s0 }
  0x1c   : > { %p584_p3 = pnand %p583_p2, %p582_p1  ;;  %p588_p6 = scmp.lt.u32.totalorder %s586_s21, %s581_s11 }
  0x1d   : > { %p590_p10 = scmp.lt.u32.totalorder %s581_s11, %s830_s6 }
  0x1e   : > { %p585_p5 = pneg %p584_p3  ;;  %p589_p7 = por %p588_p6, %p587_p4 }
  0x20   : > { %p591_p13 = por %p590_p10, %p589_p7 }
  0x22   : > { %p592_p12 = pnand %p591_p13, %p585_p5 }
  0x24   : > { %595 = shalt.err (!%p592_p12)
}
  0x25   : > { %s596_s4 = scalar_lea.vmem %s834_s8, 256  ;;  %s729_s5 = smov [#allocation3]  }
  0x26   : > { %p597_p1 = scmp.ne.s32.totalorder %s834_s8, %s596_s4  ;;  %s601_s7 = sshll.u32 %s729_s5, 4  ;;  %s602_s7 = int_to_ptr.vmem [resolvable:$false] %s601_s7 }
  0x27   : > { %s603_s18 = scalar_lea.vmem %s602_s7, 512  ;;  %p604_p9 = scmp.lt.s32.totalorder %s834_s8, %s602_s7 }
  0x28   : > { %p599_p3 = pnand %p597_p1, %p583_p2  ;;  %p605_p4 = scmp.lt.s32.totalorder %s603_s18, %s596_s4 }
  0x2a   : > { %p600_p11 = pneg %p599_p3  ;;  %p606_p6 = por %p605_p4, %p604_p9 }
  0x2c   : > { %p607_p7 = pnand %p606_p6, %p600_p11 }
  0x2e   : > { %610 = shalt.err (!%p607_p7)
}
  0x2f   : > { %s999_s11 = smov 128   ;;  %s731_s19 = smov 64  }
  0x30   : > { %s732_s21 = smov 4   ;;  %p478_p9 = scmp.ge.s32.totalorder %s727_s17, 1 }
  0x31   : > { %515 = dma.hbm_to_vmem [thread:$0]  (!%p838_p0), %s830_s6, 256, %s834_s8, %s163_s10, %s999_s11, %s731_s19, %s732_s21  }
  0x32   : > { %p210_p11 = scmp.lt.s32.totalorder %s727_s17, 3  ;;  %s884_s5 = scalar_lea.hbm %s995_s1, %s475_s30 }
  0x33   : > { %s187_s7 = scalar_lea.vmem [#allocation6], %s474_s29  ;;  %s184_s6 = scalar_lea.sflag [#allocation7], %s821_s28 }
  0x34   : > { %p875_p12 = pnand %p478_p9, %p210_p11  ;;  %s194_s18 = sshll.u32 %s187_s7, 4  ;;  %s888_s18 = int_to_ptr.vmem [resolvable:$true] %s194_s18 }
  0x35   : > { %s611_s8 = scalar_lea.hbm %s884_s5, 256  ;;  %s616_s30 = scalar_lea.hbm %s995_s1, 512 }
  0x36   : > { %p612_p5 = scmp.ne.s32.totalorder %s884_s5, %s611_s8  ;;  %p617_p1 = scmp.lt.u32.totalorder %s884_s5, %s995_s1 }
  0x37   : > { %p618_p3 = scmp.lt.u32.totalorder %s616_s30, %s611_s8  ;;  %p620_p6 = scmp.lt.u32.totalorder %s611_s8, %s884_s5 }
  0x38   : > { %p614_p10 = pnand %p612_p5, %p583_p2 }
  0x39   : > { %p619_p4 = por %p618_p3, %p617_p1 }
  0x3a   : > { %p615_p13 = pneg %p614_p10 }
  0x3b   : > { %p621_p7 = por %p620_p6, %p619_p4 }
  0x3d   : > { %p622_p9 = pnand %p621_p7, %p615_p13 }
  0x3f   : > { %625 = shalt.err (!%p622_p9)
}
  0x40   : > { %s626_s29 = scalar_lea.vmem %s888_s18, 256  ;;  %s733_s7 = smov [#allocation6]  }
  0x41   : > { %p627_p11 = scmp.ne.s32.totalorder %s888_s18, %s626_s29  ;;  %s631_s10 = sshll.u32 %s733_s7, 4  ;;  %s632_s10 = int_to_ptr.vmem [resolvable:$false] %s631_s10 }
  0x42   : > { %s633_s11 = scalar_lea.vmem %s632_s10, 512  ;;  %p634_p8 = scmp.lt.s32.totalorder %s888_s18, %s632_s10 }
  0x43   : > { %p629_p5 = pnand %p627_p11, %p583_p2  ;;  %p635_p1 = scmp.lt.s32.totalorder %s633_s11, %s626_s29 }
  0x45   : > { %p630_p10 = pneg %p629_p5  ;;  %p636_p3 = por %p635_p1, %p634_p8 }
  0x47   : > { %p637_p4 = pnand %p636_p3, %p630_p10 }
  0x49   : > { %640 = shalt.err (!%p637_p4)
}
  0x4a   : > { %s1007_s8 = smov 128   ;;  %214 = sbr.rel (%p875_p12) target bundleno = 382 (0x17e), region = 32 }
  0x4b   : > { %518 = dma.hbm_to_vmem [thread:$0]  (!%p838_p0), %s884_s5, 256, %s888_s18, %s184_s6, %s1007_s8, %s731_s19, %s732_s21  }
  0x4c   : > { %s922_s23 = sand.u32 (!%p875_p12), 1, %s711_s13   ;;  %p1008_p8 = scmp.ne.s32.totalorder (!%p875_p12), %s1002_s24, 0 }
  0x4d   : > { %s479_s30 = sshll.u32 (!%p875_p12), %s922_s23, 4  ;;  %s217_s4 = scalar_lea.sflag (!%p875_p12), [#allocation4], %s922_s23 }
  0x4e   : > { %s220_s9 = scalar_lea.vmem (!%p875_p12), [#allocation3], %s479_s30 }
  0x51   : > { %694 = dma.done.wait (%p1008_p8), %s217_s4, 256  }
  0x52   : > { %696 = vsyncadd (%p1008_p8), %s217_s4, 4294967040  ;;  %s226_s28 = scalar_lea.sflag [#allocation7], %s922_s23  ;;  %s229_s19 = scalar_lea.vmem [#allocation6], %s479_s30 }
  0x53   : > { %698 = dma.done.wait (%p1008_p8), %s226_s28, 256  }
  0x54   : > { %700 = vsyncadd (%p1008_p8), %s226_s28, 4294967040  ;;  %v734_v0 = vmov 0.0   ;;  %v487_v1 = vld [vmem:[%s220_s9] sm:$0xff]   ;;  %v502_v2 = vld [vmem:[%s220_s9 + $0x8] sm:$0xff]   ;;  %p264_p0 = scmp.lt.s32.totalorder %s719_s15, 1  ;;  %vm330_vm2 = vcmask 1040384  }
  0x55   : > { %272 = vst [vmem:[#allocation2] sm:$0x1] %v734_v0  ;;  %v495_v3 = vld [vmem:[%s229_s19] sm:$0xff]   ;;  %v488_v4 = vunpack.c.l.bf16 %v487_v1  ;;  %v489_v5 = vunpack.c.h.bf16 %v487_v1  ;;  %v492_v6 = vunpack.c.l.bf16 %v502_v2  ;;  %v493_v7 = vunpack.c.h.bf16 %v502_v2  ;;  %v503_v8 = vld [vmem:[%s229_s19 + $0x8] sm:$0xff]   ;;  %s481_s18 = sshll.u32 %s922_s23, 3  ;;  %s483_s7 = sshll.u32 %s719_s15, 7 }
  0x56   : > { %v496_v9 = vunpack.c.l.bf16 %v495_v3  ;;  %v497_v10 = vunpack.c.h.bf16 %v495_v3  ;;  %v500_v11 = vunpack.c.l.bf16 %v503_v8  ;;  %v501_v12 = vunpack.c.h.bf16 %v503_v8  ;;  %s265_s24 = scalar_select %p264_p0, %s719_s15, 1 }
  0x57   : > { %s260_s6 = scalar_lea.vmem [#allocation8], %s481_s18  ;;  %s945_s4 = scalar_lea.hbm %s997_s3, %s483_s7 }
  0x58   : > { %v290_v13 = vmul.f32 %v496_v9, %v488_v4  ;;  %v291_v14 = vmul.f32 %v497_v10, %v489_v5  ;;  %v292_v15 = vmul.f32 %v500_v11, %v492_v6  ;;  %v293_v16 = vmul.f32 %v501_v12, %v493_v7  ;;  %s266_s5 = scalar_lea.vmem %s996_s2, %s265_s24  ;;  %s358_s29 = sshll.u32 %s260_s6, 4  ;;  %s947_s29 = int_to_ptr.vmem [resolvable:$true] %s358_s29 }
  0x59   : > { %v289_v25 = vld [vmem:[%s266_s5] sm:$0x1]  ;;  %s345_s9 = scalar_lea.sflag [#allocation5], %s922_s23  ;;  %s641_s28 = scalar_lea.vmem %s947_s29, 128 }
  0x5a   : > { %v294_v17 = vadd.f32 %v291_v14, %v290_v13  ;;  %vm322_vm1 = vcmp.ne.f32.partialorder %v289_v25, 0.0  ;;  %p642_p2 = scmp.ne.s32.totalorder %s947_s29, %s641_s28  ;;  %p1009_p12 = scmp.ne.s32.totalorder %s1003_s25, 0 }
  0x5b   : > { %s735_s15 = smov [#allocation8]  }
  0x5c   : > { %v295_v18 = vadd.f32 %v294_v17, %v292_v15  ;;  %v321_v44 = vld [vmem:[#allocation2] sm:$0x1]  ;;  %p643_p13 = pnand %p642_p2, %p1009_p12  ;;  %s645_s19 = sshll.u32 %s735_s15, 4  ;;  %s646_s19 = int_to_ptr.vmem [resolvable:$false] %s645_s19 }
  0x5d   : > { %s647_s24 = scalar_lea.vmem %s646_s19, 256  ;;  %p648_p7 = scmp.lt.s32.totalorder %s947_s29, %s646_s19 }
  0x5e   : > { %v296_v19 = vadd.f32 %v295_v18, %v293_v16  ;;  %p644_p6 = pneg %p643_p13  ;;  %p649_p9 = scmp.lt.s32.totalorder %s647_s24, %s641_s28 }
  0x60   : > { %v297_v20 = vrot.slane %v296_v19, 4  ;;  %p650_p11 = por %p649_p9, %p648_p7 }
  0x62   : > { %v298_v21 = vadd.f32 %v297_v20, %v296_v19  ;;  %p651_p5 = pnand %p650_p11, %p644_p6 }
  0x64   : > { %v299_v22 = vrot.slane %v298_v21, 2 }
  0x66   : > { %v300_v23 = vadd.f32 %v299_v22, %v298_v21 }
  0x68   : > { %v301_v24 = vrot.slane %v300_v23, 1 }
  0x6a   : > { %v302_v26 = vadd.f32 %v301_v24, %v300_v23 }
  0x6c   : > { %v303_v27 = vmul.f32 %v302_v26, %v289_v25 }
  0x6e   : > { %v304_v28 = vsub.f32 0.0, %v303_v27 }
  0x70   : > { %v306_v29 = vand.u32 2147483647, %v304_v28  ;;  %v305_v39 = vmax.f32 %v304_v28, 0.0 }
  0x72   : > { %v307_v30 = vsub.f32 0.0, %v306_v29 }
  0x74   : > { %v308_v31 = vmul.f32 1.442695, %v307_v30 }
  0x76   : > { %577 = vpow2.f32 %v308_v31 }
  0x80   : > { %v578_v32 = vpop.eup %577 }
  0x81   : > { %v310_v33 = vadd.f32 1.0, %v578_v32  ;;  %v313_v34 = vmul.f32 -0.5, %v578_v32  ;;  %v316_v36 = vand.u32 2147483647, %v578_v32 }
  0x83   : > { %579 = vlog2.f32 %v310_v33  ;;  %v314_v35 = vadd.f32 1.0, %v313_v34  ;;  %vm317_vm0 = vcmp.lt.f32.partialorder %v316_v36, 0.0004427343 }
  0x85   : > { %v315_v37 = vmul.f32 %v578_v32, %v314_v35 }
  0x8d   : > { %v580_v38 = vpop.eup %579 }
  0x8e   : > { %v312_v40 = vmul.f32 0.6931472, %v580_v38 }
  0x90   : > { %v318_v41 = vsel %vm317_vm0, %v315_v37, %v312_v40 }
  0x91   : > { %v319_v42 = vadd.f32 %v318_v41, %v305_v39 }
  0x93   : > { %v320_v43 = vsub.f32 0.0, %v319_v42 }
  0x95   : > { %v323_v45 = vsel %vm322_vm1, %v320_v43, 0.0 }
  0x96   : > { %v324_v46 = vadd.f32 %v323_v45, %v321_v44 }
  0x98   : > { %325 = vst [vmem:[#allocation2] sm:$0x1] %v324_v46 }
  0x9f   : > { %v329_v47 = vld [vmem:[#allocation2] sm:$0x1] }
  0xa0   : > { %v331_v48 = vsel %vm330_vm2, %v329_v47, 0.0 }
  0xa1   : > { %332 = vadd.xlane.f32.xlu0 %v331_v48 }
 0x12e   : > { %v333_v49 = vpop.xlane.xlu0 %332 }
 0x12f   : > { %v334_v50 = vrot.slane %v333_v49, 4 }
 0x131   : > { %v335_v51 = vadd.f32 %v334_v50, %v333_v49 }
 0x133   : > { %v336_v52 = vrot.slane %v335_v51, 2 }
 0x135   : > { %v337_v53 = vadd.f32 %v336_v52, %v335_v51 }
 0x137   : > { %v338_v54 = vrot.slane %v337_v53, 1 }
 0x139   : > { %v339_v55 = vadd.f32 %v338_v54, %v337_v53 }
 0x13b   : > { %504 = vpush %v339_v55 }
 0x16c   : > { %s505_s10 = spop %504 }
 0x16d   : > { %s341_s11 = ssub.f32 0.0, %s505_s10 }
 0x16f   : > { %v342_v56 = vstv %s341_s11 }
 0x170   : > { %343 = vst [vmem:[%s260_s6] sm:$0xff] %v342_v56 }
 0x171   : > { %654 = shalt.err (!%p651_p5)
}
 0x172   : > { %s655_s23 = scalar_lea.hbm %s945_s4, 128  ;;  %s659_s5 = scalar_lea.hbm %s997_s3, 256 }
 0x173   : > { %p656_p10 = scmp.ne.s32.totalorder %s945_s4, %s655_s23  ;;  %p660_p4 = scmp.lt.u32.totalorder %s945_s4, %s997_s3 }
 0x174   : > { %p661_p8 = scmp.lt.u32.totalorder %s659_s5, %s655_s23  ;;  %p663_p2 = scmp.lt.u32.totalorder %s655_s23, %s945_s4 }
 0x175   : > { %p657_p1 = pnand %p656_p10, %p1009_p12 }
 0x176   : > { %p662_p0 = por %p661_p8, %p660_p4 }
 0x177   : > { %p658_p3 = pneg %p657_p1 }
 0x178   : > { %p664_p13 = por %p663_p2, %p662_p0 }
 0x17a   : > { %p665_p6 = pnand %p664_p13, %p658_p3 }
 0x17c   : > { %668 = shalt.err (!%p665_p6)
}
 0x17d   : > { %510 = dma.vmem_to_hbm [thread:$0]  (%p1009_p12), %s947_s29, 128, %s945_s4, %s345_s9  }
 0x17e PF: > { %s370_s7 = sand.u32 1, %s707_s12   ;;  %p1010_p7 = scmp.ne.s32.totalorder %s1004_s27, 0 }
 0x17f   : > { %p1011_p9 = scmp.ge.s32.totalorder %s727_s17, 2  ;;  %s371_s10 = scalar_lea.sflag [#allocation5], %s370_s7 }
 0x181   : > { %p520_p11 = pnand %p1011_p9, %p1010_p7 }
 0x183   : > { %702 = dma.done.wait (!%p520_p11), %s371_s10, 128  }
 0x184   : > { %704 = vsyncadd (!%p520_p11), %s371_s10, 4294967168  ;;  %s22_s17 = sadd.s32 1, %s727_s17   ;;  %s1012_s12 = smov %s711_s13 }
 0x185   : > { %p19_p5 = scmp.ge.s32.totalorder %s22_s17, 4   ;;  %s1013_s13 = smov %s715_s14 }
 0x186   : > { %s1014_s14 = smov %s812_s26  ;;  %s1015_s15 = smov %s723_s16 }
 0x187   : > { %s1016_s16 = smov %s1018_s20  ;;  %21 = sbr.rel (!%p19_p5) target bundleno = 8 (0x8), region = 101 }
 0x18e   :  { %376 = vsyncpa [#allocation4], 1 }
 0x18f   :  { %378 = vsyncpa [#allocation4 + $0x1], 1 }
 0x190   :  { %379 = vsyncpa [#allocation7], 1 }
 0x191   :  { %381 = vsyncpa [#allocation7 + $0x1], 1 }
 0x192   :  { %382 = vsyncpa [#allocation5], 1 }
 0x193   :  { %384 = vsyncpa [#allocation5 + $0x1], 1 }

</bundles_post_ra>
